<compile_context>
chip_gen: v7x
topology: tpu7x:2x2x1
jax: 0.10.0
libtpu: 0.0.40
codegen_flags: <defaults>
</compile_context>

<pallas_src>
import jax
import jax.numpy as jnp
from jax import lax
from jax.experimental import pallas as pl
from jax.experimental.pallas import tpu as pltpu


def _linreg_kernel(x_ref, cap_ref, w_ref, wcap_ref, b_ref, out_ref):
    # x_ref:    (TB, D)     feature tile (input dtype)
    # cap_ref:  (1, 1, TB)  lane-dense capacity row (f32)
    # w_ref:    (8, D)      x-weight row replicated over 8 sublanes (input dtype)
    # wcap_ref: (1,) SMEM   scalar weight acting on capacity (f32)
    # b_ref:    (1,) SMEM   scalar bias (f32)
    # out_ref:  (1, 1, TB)  lane-dense output row (f32)
    #
    # Row dot-product on the MXU: (8, D) @ (TB, D)^T -> (8, TB).  Row 0 is the
    # per-batch-row w.x, already laid out lane-dense, so the store needs no
    # sublane->lane relayout.  Accumulation in f32.
    dot = lax.dot_general(
        w_ref[...], x_ref[...],
        dimension_numbers=(((1,), (1,)), ((), ())),
        preferred_element_type=jnp.float32,
    )                                                       # (8, TB)
    out_ref[0] = dot[0:1, :] + cap_ref[0] * wcap_ref[0] + b_ref[0]


def _vmem_capacity_bytes():
    try:
        return int(pltpu.get_tpu_info().vmem_capacity_bytes)
    except Exception:
        return 64 * 1024 * 1024     # conservative fallback: v7x per-TC VMEM


def linreg_forward(x, capacity, weight, bias):
    """x: (B, *dims), capacity: (B,), weight: (1, 1+dim), bias: (1,) -> (B, 1)."""
    B = x.shape[0]
    x_flat = x.reshape(B, -1)                      # nn.Flatten (keep input dtype)
    D = x_flat.shape[1]
    if weight.shape != (1, D + 1):
        raise ValueError(
            f"weight shape {weight.shape} does not match (1, {D + 1}) "
            f"implied by flattened features of dim {D}"
        )

    # ---- batch tile size TB ---------------------------------------------
    itemsize = int(jnp.dtype(x_flat.dtype).itemsize)
    bytes_per_row = max(1, D * itemsize)
    vmem_cap = _vmem_capacity_bytes()
    per_buffer = vmem_cap // 8                     # ~16 MiB v5e/v6e, ~8 MiB v7x
    rows_by_vmem = max(8, per_buffer // bytes_per_row)
    rows_for_b = ((B + 7) // 8) * 8                # don't over-size for tiny B
    tb = int(min(4096, rows_by_vmem, rows_for_b))
    if tb >= 128:
        tb = (tb // 128) * 128                     # unmasked lane-dense stores
    else:
        tb = max(8, (tb // 8) * 8)
    # v7x megacore: guarantee >= 2 parallel grid steps when the batch allows.
    if B >= 256 and (B + tb - 1) // tb < 2:
        tb = (((B + 1) // 2) + 127) // 128 * 128

    n_tiles = (B + tb - 1) // tb
    b_pad = n_tiles * tb

    # Large inputs: NO full-copy pad of x — the ragged last tile only writes
    # output rows >= B (sliced off below).  Tiny inputs take the padded,
    # exactly-divisible path (the copy is a few KB).
    if b_pad != B and B * bytes_per_row <= (4 << 20):
        x_flat = jnp.pad(x_flat, ((0, b_pad - B), (0, 0)))

    cap = capacity.astype(jnp.float32)
    if b_pad != B:
        cap = jnp.pad(cap, (0, b_pad - B))         # (B,) pad is negligible
    cap = cap.reshape(n_tiles, 1, tb)              # lane-dense capacity rows

    # Split the Linear weight: first D columns act on x, last column on capacity.
    # Replicate the x-weight row over 8 sublanes -> safe (8, D) MXU LHS,
    # resident in VMEM (~8*D*itemsize bytes).
    w_x = jnp.broadcast_to(weight[:, :D], (8, D)).astype(x_flat.dtype)
    w_cap = weight[0, D:].astype(jnp.float32).reshape(1)    # (1,) SMEM scalar
    b = bias.astype(jnp.float32).reshape(1)                 # (1,) SMEM scalar

    cost = pl.CostEstimate(
        flops=2 * B * (D + 1),
        transcendentals=0,
        bytes_accessed=B * D * itemsize + B * 4 * 2 + (D + 1) * 4,
    )
    vmem_limit = int(min(100 * 1024 * 1024, vmem_cap * 3 // 4))

    out = pl.pallas_call(
        _linreg_kernel,
        out_shape=jax.ShapeDtypeStruct((n_tiles, 1, tb), jnp.float32),
        grid=(n_tiles,),
        in_specs=[
            pl.BlockSpec((tb, D), lambda i: (i, 0)),                   # x tile
            pl.BlockSpec((1, 1, tb), lambda i: (i, 0, 0)),             # capacity row
            pl.BlockSpec((8, D), lambda i: (0, 0)),                    # w_x (resident)
            pl.BlockSpec(memory_space=pltpu.MemorySpace.SMEM),         # w_cap scalar
            pl.BlockSpec(memory_space=pltpu.MemorySpace.SMEM),         # bias scalar
        ],
        out_specs=pl.BlockSpec((1, 1, tb), lambda i: (i, 0, 0)),
        compiler_params=pltpu.CompilerParams(
            dimension_semantics=("parallel",),     # independent B tiles; v7x 2-TC shard
            vmem_limit_bytes=vmem_limit,
        ),
        cost_estimate=cost,
    )(x_flat, cap, w_x, w_cap, b)

    return out.reshape(-1)[:B].reshape(B, 1)


if __name__ == "__main__":
    key = jax.random.PRNGKey(0)
    k_x, k_cap, k_w, k_b = jax.random.split(key, 4)

    # Small NCHW-like input: (B=2, C=4, H=16, W=16) -> dim = 4*16*16 = 1024
    B, C, H, W = 2, 4, 16, 16
    dim = C * H * W

    x = jax.random.normal(k_x, (B, C, H, W), dtype=jnp.float32)
    capacity = jax.random.normal(k_cap, (B,), dtype=jnp.float32)

    # Deterministic parameter init (same shapes as nn.Linear(1+dim, 1)):
    # uniform(-1/sqrt(fan_in), 1/sqrt(fan_in)), fan_in = 1 + dim
    bound = 1.0 / jnp.sqrt(jnp.float32(1 + dim))
    weight = jax.random.uniform(k_w, (1, 1 + dim), minval=-bound, maxval=bound,
                                dtype=jnp.float32)
    bias = jax.random.uniform(k_b, (1,), minval=-bound, maxval=bound,
                              dtype=jnp.float32)

    out = linreg_forward(x, capacity, weight, bias)
    out = jax.block_until_ready(out)

    # Sanity check vs. plain-JAX reference of the torch semantics.
    x_flat = x.reshape(B, -1)
    cat = jnp.concatenate([x_flat, capacity[:, None]], axis=1)
    ref = cat @ weight.T + bias
    assert out.shape == (B, 1)
    assert jnp.allclose(out, ref, atol=1e-3, rtol=1e-3)

    print("KERNEL_OK")
</pallas_src>

<mosaic_0001>
module attributes {stable_mosaic.version = 11 : i64} {
  func.func @_linreg_kernel(%arg0: i32, %arg1: memref<8x1024xf32, #tpu.memory_space<vmem>>, %arg2: memref<1x1x8xf32, #tpu.memory_space<vmem>>, %arg3: memref<8x1024xf32, #tpu.memory_space<vmem>>, %arg4: memref<1xf32, #tpu.memory_space<smem>>, %arg5: memref<1xf32, #tpu.memory_space<smem>>, %arg6: memref<1x1x8xf32, #tpu.memory_space<vmem>>) attributes {dimension_semantics = [#tpu.dimension_semantics<parallel>], iteration_bounds = array<i64: 1>, scalar_prefetch = 0 : i64, scratch_operands = 0 : i64, tpu.core_type = #tpu.core_type<tc>, window_params = [{transform_indices = @transform_0, window_bounds = array<i64: 8, 1024>}, {transform_indices = @transform_1, window_bounds = array<i64: 1, 1, 8>}, {pipeline_mode = #tpu.pipeline_mode<synchronous>, transform_indices = @transform_2, window_bounds = array<i64: 8, 1024>}, {transform_indices = @transform_3, window_bounds = array<i64: 1>}, {transform_indices = @transform_4, window_bounds = array<i64: 1>}, {transform_indices = @transform_5, window_bounds = array<i64: 1, 1, 8>}]} {
    %c0 = arith.constant 0 : index
    %c0_0 = arith.constant 0 : index
    %0 = vector.load %arg3[%c0, %c0_0] : memref<8x1024xf32, #tpu.memory_space<vmem>>, vector<8x1024xf32>
    %c0_1 = arith.constant 0 : index
    %c0_2 = arith.constant 0 : index
    %1 = vector.load %arg1[%c0_1, %c0_2] : memref<8x1024xf32, #tpu.memory_space<vmem>>, vector<8x1024xf32>
    %cst = arith.constant dense<0.000000e+00> : vector<8x8xf32>
    %2 = tpu.matmul %0, %1, %cst {dimension_numbers = #tpu.dot_dimension_numbers<[1], [1], [0], [0], [0, 0, 1, 0], [], []>} : vector<8x1024xf32>, vector<8x1024xf32>, vector<8x8xf32> -> vector<8x8xf32>
    %3 = vector.extract_strided_slice %2 {offsets = [0, 0], sizes = [1, 8], strides = [1, 1]} : vector<8x8xf32> to vector<1x8xf32>
    %c0_3 = arith.constant 0 : index
    %c0_4 = arith.constant 0 : index
    %c0_5 = arith.constant 0 : index
    %4 = vector.load %arg2[%c0_3, %c0_4, %c0_5] : memref<1x1x8xf32, #tpu.memory_space<vmem>>, vector<1x1x8xf32>
    %5 = vector.shape_cast %4 : vector<1x1x8xf32> to vector<1x8xf32>
    %c0_6 = arith.constant 0 : index
    %6 = memref.load %arg4[%c0_6] : memref<1xf32, #tpu.memory_space<smem>>
    %7 = vector.broadcast %6 : f32 to vector<1x8xf32>
    %8 = arith.mulf %5, %7 : vector<1x8xf32>
    %9 = arith.addf %3, %8 : vector<1x8xf32>
    %c0_7 = arith.constant 0 : index
    %10 = memref.load %arg5[%c0_7] : memref<1xf32, #tpu.memory_space<smem>>
    %11 = vector.broadcast %10 : f32 to vector<1x8xf32>
    %12 = arith.addf %9, %11 : vector<1x8xf32>
    %c0_8 = arith.constant 0 : index
    %c0_9 = arith.constant 0 : index
    %c0_10 = arith.constant 0 : index
    %13 = vector.load %arg6[%c0_8, %c0_9, %c0_10] : memref<1x1x8xf32, #tpu.memory_space<vmem>>, vector<1x1x8xf32>
    %14 = vector.shape_cast %13 : vector<1x1x8xf32> to vector<1x8xf32>
    %15 = vector.shape_cast %12 : vector<1x8xf32> to vector<1x1x8xf32>
    tpu.vector_store %arg6[%c0_8, %c0_9, %c0_10], %15 {strides = array<i32>} : memref<1x1x8xf32, #tpu.memory_space<vmem>>, vector<1x1x8xf32>,
    return
  }
  func.func @transform_0(%arg0: i32) -> (i32, i32) {
    %c0_i32 = arith.constant 0 : i32
    %c0_i32_0 = arith.constant 0 : i32
    return %arg0, %c0_i32 : i32, i32
  }
  func.func @transform_1(%arg0: i32) -> (i32, i32, i32) {
    %c0_i32 = arith.constant 0 : i32
    %c0_i32_0 = arith.constant 0 : i32
    %c0_i32_1 = arith.constant 0 : i32
    return %arg0, %c0_i32, %c0_i32_0 : i32, i32, i32
  }
  func.func @transform_2(%arg0: i32) -> (i32, i32) {
    %c0_i32 = arith.constant 0 : i32
    %c0_i32_0 = arith.constant 0 : i32
    %c0_i32_1 = arith.constant 0 : i32
    return %c0_i32, %c0_i32_0 : i32, i32
  }
  func.func @transform_3(%arg0: i32) -> i32 {
    %c0_i32 = arith.constant 0 : i32
    %c0_i32_0 = arith.constant 0 : i32
    return %c0_i32 : i32
  }
  func.func @transform_4(%arg0: i32) -> i32 {
    %c0_i32 = arith.constant 0 : i32
    %c0_i32_0 = arith.constant 0 : i32
    return %c0_i32 : i32
  }
  func.func @transform_5(%arg0: i32) -> (i32, i32, i32) {
    %c0_i32 = arith.constant 0 : i32
    %c0_i32_0 = arith.constant 0 : i32
    %c0_i32_1 = arith.constant 0 : i32
    return %arg0, %c0_i32, %c0_i32_0 : i32, i32, i32
  }
}

</mosaic_0001>

<bundles_post_ra>
// kernel: tpu_custom_call.1
= control target key start
LH: loop header
LB: loop body
LE: loop exit
PB: predicated region body
PF: predicated region fallthrough
CT: control target
= control target key end

     0   :  { %12 = vsyncpa [#allocation5], 0  ;;  %s522_s0 = inlined_call_operand.hbm [shape: f32[8,1024], index: 0, kind: input, shape index: {}]   ;;  %s523_s1 = inlined_call_operand.vmem [shape: f32[1,1,8], index: 1, kind: input, shape index: {}]   ;;  %s524_s2 = inlined_call_operand.hbm [shape: f32[8,1024], index: 2, kind: input, shape index: {}]   ;;  %s525_s3 = inlined_call_operand.<no memory space> [shape: f32[1], index: 3, kind: input, shape index: {}]   ;;  %s526_s4 = inlined_call_operand.<no memory space> [shape: f32[1], index: 4, kind: input, shape index: {}]   ;;  %s527_s5 = inlined_call_operand.hbm [shape: f32[1,1,8], index: 5, kind: output, shape index: {}]  }
   0x1   :  { %13 = vsyncpa [#allocation8], 0 }
   0x2   :  { %14 = vsyncpa [#allocation6], 0  ;;  %s444_s18 = smov [#allocation4]   ;;  %s445_s20 = smov [#allocation7]  }
   0x3   :  { %s21_s19 = sshll.u32 %s444_s18, 4  ;;  %s33_s21 = sshll.u32 %s445_s20, 4  ;;  %s22_s19 = int_to_ptr.vmem [resolvable:$true] %s21_s19  ;;  %s34_s21 = int_to_ptr.vmem [resolvable:$true] %s33_s21 }
   0x4   :  { %s372_s24 = scalar_lea.hbm %s522_s0, 1024 }
   0x5   :  { %p373_p0 = scmp.ne.s32.totalorder %s522_s0, %s372_s24  ;;  %p376_p1 = scmp.lt.u32.totalorder %s372_s24, %s522_s0 }
   0x7   :  { %p378_p2 = pnand %p376_p1, %p373_p0 }
   0x9   :  { %381 = shalt.err (!%p378_p2)
}
   0xa   :  { %s382_s29 = scalar_lea.vmem %s22_s19, 1024  ;;  %p387_p4 = scmp.lt.s32.totalorder %s22_s19, %s22_s19 }
   0xb   :  { %p383_p3 = scmp.ne.s32.totalorder %s22_s19, %s382_s29  ;;  %p388_p5 = scmp.lt.s32.totalorder %s382_s29, %s382_s29 }
   0xd   :  { %p389_p6 = por %p388_p5, %p387_p4 }
   0xf   :  { %p390_p7 = pnand %p389_p6, %p383_p3 }
  0x11   :  { %393 = shalt.err (!%p390_p7)
}
  0x12   :  { %24 = dma.hbm_to_vmem [thread:$0]  %s522_s0, 1024, %s22_s19, [#allocation5]  }
  0x13   :  { %s394_s9 = scalar_lea.hbm %s524_s2, 1024 }
  0x14   :  { %p395_p8 = scmp.ne.s32.totalorder %s524_s2, %s394_s9  ;;  %p398_p9 = scmp.lt.u32.totalorder %s394_s9, %s524_s2 }
  0x16   :  { %p400_p10 = pnand %p398_p9, %p395_p8 }
  0x18   :  { %403 = shalt.err (!%p400_p10)
}
  0x19   :  { %s404_s14 = scalar_lea.vmem %s34_s21, 1024  ;;  %p409_p12 = scmp.lt.s32.totalorder %s34_s21, %s34_s21 }
  0x1a   :  { %p405_p11 = scmp.ne.s32.totalorder %s34_s21, %s404_s14  ;;  %p410_p13 = scmp.lt.s32.totalorder %s404_s14, %s404_s14 }
  0x1c   :  { %p411_p0 = por %p410_p13, %p409_p12 }
  0x1e   :  { %p412_p1 = pnand %p411_p0, %p405_p11 }
  0x20   :  { %415 = shalt.err (!%p412_p1)
}
  0x21   :  { %36 = dma.hbm_to_vmem [thread:$0]  %s524_s2, 1024, %s34_s21, [#allocation8]  }
  0x22   :  { %438 = dma.done.wait [#allocation5], 1024  }
  0x23   :  { %439 = vsyncadd [#allocation5], 4294966272 }
  0x24   :  { %440 = dma.done.wait [#allocation8], 1024  }
  0x25   :  { %441 = vsyncadd [#allocation8], 4294966272  ;;  %v56_v0 = vld [vmem:[#allocation4 + $0x8] sm:$0xff]  ;;  %v55_v1 = vld [vmem:[#allocation4] sm:$0xff]  ;;  %v345_v22 = vstv %s525_s3  ;;  %v349_v30 = vstv %s526_s4  ;;  %s446_s21 = smov [#allocation9]   ;;  %vm351_vm0 = vcmask 57344  }
  0x26   :  { %v58_v2 = vld [vmem:[#allocation4 + $0x18] sm:$0xff]  ;;  %63 = vmatprep.subr.mxu0 %v56_v0  ;;  %v57_v3 = vld [vmem:[#allocation4 + $0x10] sm:$0xff]  ;;  %v48_v4 = vld [vmem:[#allocation7 + $0x8] sm:$0xff]  ;;  %s359_s22 = sshll.u32 %s446_s21, 4  ;;  %s360_s22 = int_to_ptr.vmem [resolvable:$true] %s359_s22 }
  0x27   :  { %133 = vmatprep.subr.mxu1 %v58_v2  ;;  %v47_v5 = vld [vmem:[#allocation7] sm:$0xff]  ;;  %64 = vmatpush1.xpose.msra.mxu0 %v55_v1  ;;  %v50_v6 = vld [vmem:[#allocation7 + $0x18] sm:$0xff]  ;;  %v60_v7 = vld [vmem:[#allocation4 + $0x28] sm:$0xff]  ;;  %s420_s3 = scalar_lea.vmem %s360_s22, 32  ;;  %p421_p3 = scmp.lt.s32.totalorder %s360_s22, %s360_s22 }
  0x28   :  { %134 = vmatpush1.xpose.msra.mxu1 %v57_v3  ;;  %v49_v8 = vld [vmem:[#allocation7 + $0x10] sm:$0xff]  ;;  %127 = vmatprep.mubr.f32.mxu0 %v48_v4  ;;  %v59_v9 = vld [vmem:[#allocation4 + $0x20] sm:$0xff]  ;;  %v62_v10 = vld [vmem:[#allocation4 + $0x38] sm:$0xff] }
  0x29   :  { %197 = vmatprep.mubr.f32.mxu1 %v50_v6  ;;  %v52_v11 = vld [vmem:[#allocation7 + $0x28] sm:$0xff]  ;;  %203 = vmatprep.subr.mxu0 %v60_v7  ;;  %v61_v12 = vld [vmem:[#allocation4 + $0x30] sm:$0xff]  ;;  %v54_v13 = vld [vmem:[#allocation7 + $0x38] sm:$0xff] }
  0x2a   :  { %273 = vmatprep.subr.mxu1 %v62_v10  ;;  %128 = vmatmul.mubr.f32.vlgmr.msra.gmra.mrb[0].mxu0 %v47_v5  ;;  %v51_v14 = vld [vmem:[#allocation7 + $0x20] sm:$0xff]  ;;  %v53_v15 = vld [vmem:[#allocation7 + $0x30] sm:$0xff] }
  0x2b   :  { %198 = vmatmul.mubr.f32.vlgmr.msra.gmra.mrb[0].mxu1 %v49_v8  ;;  %204 = vmatpush1.xpose.msra.mxu0 %v59_v9  ;;  %v343_v21 = vld [vmem:[%s523_s1] sm:$0x1]  ;;  %s416_s1 = scalar_lea.vmem %s360_s22, 16 }
  0x2c   :  { %267 = vmatprep.mubr.f32.mxu0 %v52_v11  ;;  %274 = vmatpush1.xpose.msra.mxu1 %v61_v12  ;;  %v346_v27 = vmul.f32 %v345_v22, %v343_v21  ;;  %p417_p2 = scmp.ne.s32.totalorder %s360_s22, %s416_s1  ;;  %p422_p4 = scmp.lt.s32.totalorder %s420_s3, %s416_s1 }
  0x2d   :  { %337 = vmatprep.mubr.f32.mxu1 %v54_v13 }
  0x2e   :  { %268 = vmatmul.mubr.f32.vlgmr.msra.gmra.mrb[2].mxu0 %v51_v14  ;;  %p423_p5 = por %p422_p4, %p421_p3 }
  0x2f   :  { %338 = vmatmul.mubr.f32.vlgmr.msra.gmra.mrb[2].mxu1 %v53_v15 }
  0x30   :  { %p424_p6 = pnand %p423_p5, %p417_p2 }
  0xfd   :  { %v129_v16 = vpop.f32.mrb[0].mxu0 }
  0xfe   :  { %v199_v17 = vpop.f32.mrb[0].mxu1  ;;  %v131_v18 = vpop.f32.mrb[1].mxu0 }
  0xff   :  { %v200_v19 = vadd.f32 %v199_v17, %v129_v16  ;;  %v201_v20 = vpop.f32.mrb[1].mxu1 }
 0x101   :  { %v269_v23 = vpop.f32.mrb[2].mxu0 }
 0x102   :  { %v270_v24 = vadd.f32 %v269_v23, %v200_v19  ;;  %v271_v25 = vpop.f32.mrb[3].mxu0  ;;  %v339_v26 = vpop.f32.mrb[2].mxu1 }
 0x103   :  { %v341_v28 = vpop.f32.mrb[3].mxu1 }
 0x104   :  { %v340_v29 = vadd.f32 %v339_v26, %v270_v24 }
 0x106   :  { %v347_v31 = vadd.f32 %v346_v27, %v340_v29 }
 0x108   :  { %v350_v32 = vadd.f32 %v349_v30, %v347_v31 }
 0x10a   :  { %352 = vst.msk [vmem:[#allocation9] sm:$0x1] %vm351_vm0, %v350_v32 }
 0x10b   :  { %427 = shalt.err (!%p424_p6)
}
 0x10c   :  { %s428_s25 = scalar_lea.hbm %s527_s5, 16 }
 0x10d   :  { %p429_p7 = scmp.ne.s32.totalorder %s527_s5, %s428_s25  ;;  %p432_p8 = scmp.lt.u32.totalorder %s428_s25, %s527_s5 }
 0x10f   :  { %p434_p9 = pnand %p432_p8, %p429_p7 }
 0x111   :  { %437 = shalt.err (!%p434_p9)
}
 0x112   :  { %362 = dma.vmem_to_hbm [thread:$0]  %s360_s22, 16, %s527_s5, [#allocation6]  }
 0x113   :  { %442 = dma.done.wait [#allocation6], 16  }
 0x114   :  { %443 = vsyncadd [#allocation6], 4294967280 }
 0x115   :  { %366 = vsyncpa [#allocation5], 1 }
 0x116   :  { %367 = vsyncpa [#allocation8], 1 }
 0x117   :  { %368 = vsyncpa [#allocation6], 1 }

</bundles_post_ra>
